<compile_context>
chip_gen: v6e
topology: v6e:2x2x1
jax: 0.10.0
libtpu: 0.0.40
codegen_flags: <defaults>
</compile_context>

<pallas_src>
import functools

import jax
import jax.numpy as jnp
from jax import lax
from jax.experimental import pallas as pl
from jax.experimental.pallas import tpu as pltpu


def _bilstm_fused_kernel(gx_ref, whh_ref, y_ref, h_sc, c_sc, *, chunk, hd):
    """Fused bidirectional LSTM recurrence over one time chunk.

    gx_ref  : (chunk, B, 8*Hd) bf16  precomputed x @ W_ih^T + b, gate-permuted
              columns [i|f|o|g], each gate block = [fwd, bwd]; i/f/o columns
              pre-scaled by 0.5; backward columns already time-reversed.
    whh_ref : (2*Hd, 8*Hd)     bf16  block-diagonal hidden-to-hidden weights
              (rows 0:Hd -> fwd, Hd:2Hd -> bwd), same column layout/scaling.
    y_ref   : (chunk, B, 2*Hd)       fused hidden state [h_fwd, h_bwd_rev].
    h_sc/c_sc: (B, 2*Hd) f32 VMEM scratch — carry across time chunks.
    """
    hd2 = 2 * hd

    @pl.when(pl.program_id(0) == 0)
    def _():
        h_sc[...] = jnp.zeros_like(h_sc)
        c_sc[...] = jnp.zeros_like(c_sc)

    whh = whh_ref[...]  # resident across the whole chunk loop

    def step(s, carry):
        h, c = carry  # f32 (B, 2*Hd)
        # Only the (small) hidden-to-hidden matmul is on the serial path.
        gates = gx_ref[s].astype(jnp.float32) + jnp.dot(
            h.astype(whh.dtype), whh, preferred_element_type=jnp.float32
        )  # (B, 8*Hd) f32, columns [i | f | o | g], each [fwd, bwd]
        t = jnp.tanh(gates)                    # single EUP pass, full width
        sig = 0.5 * t[:, : 3 * hd2] + 0.5      # sigmoid(x) = 0.5*tanh(x/2)+0.5
        i_g = sig[:, 0 * hd2:1 * hd2]
        f_g = sig[:, 1 * hd2:2 * hd2]
        o_g = sig[:, 2 * hd2:3 * hd2]
        g_g = t[:, 3 * hd2:4 * hd2]
        c_new = f_g * c + i_g * g_g
        h_new = o_g * jnp.tanh(c_new)
        y_ref[s] = h_new.astype(y_ref.dtype)
        return h_new, c_new

    h, c = lax.fori_loop(0, chunk, step, (h_sc[...], c_sc[...]),
                         unroll=min(chunk, 8))
    h_sc[...] = h
    c_sc[...] = c


def _permute_scale_cols(w_t, hd):
    """(in, 4*Hd) with PyTorch column blocks [i,f,g,o] -> (in, 4, Hd) blocks
    [i,f,o,g] with the sigmoid gates (i,f,o) pre-scaled by 0.5."""
    i = w_t[:, 0 * hd:1 * hd]
    f = w_t[:, 1 * hd:2 * hd]
    g = w_t[:, 2 * hd:3 * hd]
    o = w_t[:, 3 * hd:4 * hd]
    return jnp.stack([0.5 * i, 0.5 * f, 0.5 * o, g], axis=1)


def _fuse_params(params, hd):
    """Build fused weights for the bidirectional recurrence.

    Fused gate column layout (width 8*Hd), gate-major / direction-minor:
        [ i_f | i_b | f_f | f_b | o_f | o_b | g_f | g_b ]
    """
    e = params["w_ih_f"].shape[1]

    wih_f = _permute_scale_cols(params["w_ih_f"].T, hd)   # (E, 4, Hd)
    wih_b = _permute_scale_cols(params["w_ih_b"].T, hd)
    wih = jnp.stack([wih_f, wih_b], axis=2).reshape(e, 8 * hd)     # (E, 8Hd)

    whh_f = _permute_scale_cols(params["w_hh_f"].T, hd)   # (Hd, 4, Hd)
    whh_b = _permute_scale_cols(params["w_hh_b"].T, hd)
    whh = jnp.zeros((2, hd, 4, 2, hd), jnp.float32)
    whh = whh.at[0, :, :, 0, :].set(whh_f)                 # block-diagonal
    whh = whh.at[1, :, :, 1, :].set(whh_b)
    whh = whh.reshape(2 * hd, 8 * hd)                      # (2Hd, 8Hd)

    def _bias(b):
        i = b[0 * hd:1 * hd]
        f = b[1 * hd:2 * hd]
        g = b[2 * hd:3 * hd]
        o = b[3 * hd:4 * hd]
        return jnp.stack([0.5 * i, 0.5 * f, 0.5 * o, g], axis=0)   # (4, Hd)

    b_f = _bias(params["b_ih_f"] + params["b_hh_f"])
    b_b = _bias(params["b_ih_b"] + params["b_hh_b"])
    bias = jnp.stack([b_f, b_b], axis=1).reshape(8 * hd)           # (8Hd,)

    return wih, whh, bias


def _pick_time_chunk(seq_len, cap=256):
    c = min(seq_len, cap)
    while seq_len % c:
        c -= 1
    return c


def subj_lstm_forward(inputs_bte, params):
    """Bidirectional LSTM forward.

    inputs_bte: (B, T, E)   equal-length sequences, batch-first
    returns:    (B, T, 2*Hd) == PyTorch outputs with batch_first=True
    """
    B, T, E = inputs_bte.shape
    hd = params["w_hh_f"].shape[1]  # w_hh: (4*Hd, Hd)
    out_dtype = inputs_bte.dtype

    wih, whh, bias = _fuse_params(params, hd)
    whh_bf16 = whh.astype(jnp.bfloat16)

    # Hoisted input projection: one batched MXU matmul for all T steps and
    # both directions (bf16 operands, f32 accumulation), bias folded in.
    x_tbe = jnp.transpose(inputs_bte, (1, 0, 2))           # time-major (T,B,E)
    gx = jnp.einsum(
        "tbe,ef->tbf",
        x_tbe.astype(jnp.bfloat16),
        wih.astype(jnp.bfloat16),
        preferred_element_type=jnp.float32,
    ) + bias[None, None, :]                                # (T, B, 8Hd) f32

    # Time-reverse the backward-direction columns so the kernel's loop index
    # is a plain forward index for BOTH directions (static addressing).
    gx = gx.reshape(T, B, 4, 2, hd)
    gx = jnp.concatenate([gx[:, :, :, :1, :], gx[::-1, :, :, 1:, :]], axis=3)
    gx = gx.reshape(T, B, 8 * hd).astype(jnp.bfloat16)     # bf16 slab for HBM/VMEM

    chunk = _pick_time_chunk(T)
    kernel = functools.partial(_bilstm_fused_kernel, chunk=chunk, hd=hd)

    y = pl.pallas_call(
        kernel,
        out_shape=jax.ShapeDtypeStruct((T, B, 2 * hd), out_dtype),
        grid_spec=pltpu.PrefetchScalarGridSpec(
            num_scalar_prefetch=0,
            grid=(T // chunk,),  # time chunks; h/c carried in VMEM scratch
            in_specs=[
                pl.BlockSpec((chunk, B, 8 * hd), lambda c: (c, 0, 0)),
                pl.BlockSpec((2 * hd, 8 * hd), lambda c: (0, 0)),
            ],
            out_specs=pl.BlockSpec((chunk, B, 2 * hd), lambda c: (c, 0, 0)),
            scratch_shapes=[
                pltpu.VMEM((B, 2 * hd), jnp.float32),   # h carry
                pltpu.VMEM((B, 2 * hd), jnp.float32),   # c carry
            ],
        ),
        compiler_params=pltpu.CompilerParams(
            # sequential carry across time chunks -> "arbitrary"
            dimension_semantics=("arbitrary",),
        ),
    )(gx, whh_bf16)

    # y[s] = [h_fwd(time s), h_bwd(time T-1-s)]; un-reverse the backward half.
    y_f = y[:, :, :hd]                    # (T, B, Hd)
    y_b = y[::-1, :, hd:]                 # (T, B, Hd)
    out = jnp.concatenate([y_f, y_b], axis=-1)            # (T, B, 2Hd)
    return jnp.transpose(out, (1, 0, 2))                  # (B, T, 2Hd)


def init_params(key, embedding_dim, hidden_dim):
    """Deterministic parameter init mirroring subjLSTM.init_weight.

    Weights: kaiming_normal_ fan_in (std = sqrt(2 / fan_in)).
    Biases:  PyTorch LSTM default U(-1/sqrt(Hd), 1/sqrt(Hd)).
    """
    hd = hidden_dim // 2  # bidirectional -> per-direction hidden size
    keys = jax.random.split(key, 8)
    bound = 1.0 / jnp.sqrt(hd)

    def kaiming(k, shape, fan_in):
        return jax.random.normal(k, shape, jnp.float32) * jnp.sqrt(2.0 / fan_in)

    params = {
        "w_ih_f": kaiming(keys[0], (4 * hd, embedding_dim), embedding_dim),
        "w_hh_f": kaiming(keys[1], (4 * hd, hd), hd),
        "b_ih_f": jax.random.uniform(keys[2], (4 * hd,), jnp.float32, -bound, bound),
        "b_hh_f": jax.random.uniform(keys[3], (4 * hd,), jnp.float32, -bound, bound),
        "w_ih_b": kaiming(keys[4], (4 * hd, embedding_dim), embedding_dim),
        "w_hh_b": kaiming(keys[5], (4 * hd, hd), hd),
        "b_ih_b": jax.random.uniform(keys[6], (4 * hd,), jnp.float32, -bound, bound),
        "b_hh_b": jax.random.uniform(keys[7], (4 * hd,), jnp.float32, -bound, bound),
    }
    return params


if __name__ == "__main__":
    # Small shapes consistent with subjLSTM: batch=2, seq=8,
    # embedding_dim=32, hidden_dim=32 (per-direction Hd=16, output dim 32).
    B, T, E, HIDDEN = 2, 8, 32, 32

    key = jax.random.PRNGKey(0)
    k_x, k_p = jax.random.split(key)
    x = jax.random.normal(k_x, (B, T, E), jnp.float32)
    params = init_params(k_p, E, HIDDEN)

    out = jax.jit(subj_lstm_forward)(x, params)
    out = jax.block_until_ready(out)

    assert out.shape == (B, T, HIDDEN), out.shape
    assert jnp.all(jnp.isfinite(out))
    print("KERNEL_OK")
</pallas_src>

<mosaic_0001>
module attributes {stable_mosaic.version = 11 : i64} {
  func.func @_bilstm_fused_kernel(%arg0: i32, %arg1: memref<8x2x128xbf16, #tpu.memory_space<vmem>>, %arg2: memref<32x128xbf16, #tpu.memory_space<vmem>>, %arg3: memref<8x2x32xf32, #tpu.memory_space<vmem>>, %arg4: memref<2x32xf32, #tpu.memory_space<vmem>>, %arg5: memref<2x32xf32, #tpu.memory_space<vmem>>) attributes {dimension_semantics = [#tpu.dimension_semantics<arbitrary>], iteration_bounds = array<i64: 1>, scalar_prefetch = 0 : i64, scratch_operands = 2 : i64, tpu.core_type = #tpu.core_type<tc>, window_params = [{transform_indices = @transform_0, window_bounds = array<i64: 8, 2, 128>}, {pipeline_mode = #tpu.pipeline_mode<synchronous>, transform_indices = @transform_1, window_bounds = array<i64: 32, 128>}, {transform_indices = @transform_2, window_bounds = array<i64: 8, 2, 32>}]} {
    %c0_i32 = arith.constant 0 : i32
    %0 = arith.cmpi eq, %arg0, %c0_i32 : i32
    %1 = arith.extui %0 : i1 to i32
    %c0_i32_0 = arith.constant 0 : i32
    %2 = arith.cmpi ne, %1, %c0_i32_0 : i32
    scf.if %2 {
      %cst_66 = arith.constant 0.000000e+00 : f32
      %216 = vector.broadcast %cst_66 : f32 to vector<2x32xf32>
      %c0_67 = arith.constant 0 : index
      %c0_68 = arith.constant 0 : index
      %217 = vector.load %arg4[%c0_67, %c0_68] : memref<2x32xf32, #tpu.memory_space<vmem>>, vector<2x32xf32>
      tpu.vector_store %arg4[%c0_67, %c0_68], %216 {strides = array<i32>} : memref<2x32xf32, #tpu.memory_space<vmem>>, vector<2x32xf32>,
      %cst_69 = arith.constant 0.000000e+00 : f32
      %218 = vector.broadcast %cst_69 : f32 to vector<2x32xf32>
      %c0_70 = arith.constant 0 : index
      %c0_71 = arith.constant 0 : index
      %219 = vector.load %arg5[%c0_70, %c0_71] : memref<2x32xf32, #tpu.memory_space<vmem>>, vector<2x32xf32>
      tpu.vector_store %arg5[%c0_70, %c0_71], %218 {strides = array<i32>} : memref<2x32xf32, #tpu.memory_space<vmem>>, vector<2x32xf32>,
    } else {
    }
    %c0 = arith.constant 0 : index
    %c0_1 = arith.constant 0 : index
    %3 = vector.load %arg2[%c0, %c0_1] : memref<32x128xbf16, #tpu.memory_space<vmem>>, vector<32x128xbf16>
    %c0_2 = arith.constant 0 : index
    %c0_3 = arith.constant 0 : index
    %4 = vector.load %arg4[%c0_2, %c0_3] : memref<2x32xf32, #tpu.memory_space<vmem>>, vector<2x32xf32>
    %c0_4 = arith.constant 0 : index
    %c0_5 = arith.constant 0 : index
    %5 = vector.load %arg5[%c0_4, %c0_5] : memref<2x32xf32, #tpu.memory_space<vmem>>, vector<2x32xf32>
    %c0_i32_6 = arith.constant 0 : i32
    %6 = arith.index_cast %c0_i32_6 : i32 to index
    %c0_7 = arith.constant 0 : index
    %c0_8 = arith.constant 0 : index
    %7 = vector.load %arg1[%6, %c0_7, %c0_8] : memref<8x2x128xbf16, #tpu.memory_space<vmem>>, vector<1x2x128xbf16>
    %8 = vector.shape_cast %7 : vector<1x2x128xbf16> to vector<2x128xbf16>
    %9 = arith.extf %8 : vector<2x128xbf16> to vector<2x128xf32>
    %10 = arith.truncf %4 : vector<2x32xf32> to vector<2x32xbf16>
    %cst = arith.constant dense<0.000000e+00> : vector<2x128xf32>
    %11 = tpu.matmul %10, %3, %cst {dimension_numbers = #tpu.dot_dimension_numbers<[1], [0], [0], [1], [0, 0, 1, 1], [], []>} : vector<2x32xbf16>, vector<32x128xbf16>, vector<2x128xf32> -> vector<2x128xf32>
    %12 = arith.addf %9, %11 : vector<2x128xf32>
    %13 = math.tanh %12 : vector<2x128xf32>
    %14 = vector.extract_strided_slice %13 {offsets = [0, 0], sizes = [2, 96], strides = [1, 1]} : vector<2x128xf32> to vector<2x96xf32>
    %cst_9 = arith.constant 5.000000e-01 : f32
    %15 = vector.broadcast %cst_9 : f32 to vector<2x96xf32>
    %16 = arith.mulf %15, %14 : vector<2x96xf32>
    %cst_10 = arith.constant 5.000000e-01 : f32
    %17 = vector.broadcast %cst_10 : f32 to vector<2x96xf32>
    %18 = arith.addf %16, %17 : vector<2x96xf32>
    %19 = vector.extract_strided_slice %18 {offsets = [0, 0], sizes = [2, 32], strides = [1, 1]} : vector<2x96xf32> to vector<2x32xf32>
    %20 = vector.extract_strided_slice %18 {offsets = [0, 32], sizes = [2, 32], strides = [1, 1]} : vector<2x96xf32> to vector<2x32xf32>
    %21 = vector.extract_strided_slice %18 {offsets = [0, 64], sizes = [2, 32], strides = [1, 1]} : vector<2x96xf32> to vector<2x32xf32>
    %22 = vector.extract_strided_slice %13 {offsets = [0, 96], sizes = [2, 32], strides = [1, 1]} : vector<2x128xf32> to vector<2x32xf32>
    %23 = arith.mulf %20, %5 : vector<2x32xf32>
    %24 = arith.mulf %19, %22 : vector<2x32xf32>
    %25 = arith.addf %23, %24 : vector<2x32xf32>
    %26 = math.tanh %25 : vector<2x32xf32>
    %27 = arith.mulf %21, %26 : vector<2x32xf32>
    %28 = arith.index_cast %c0_i32_6 : i32 to index
    %c0_11 = arith.constant 0 : index
    %c0_12 = arith.constant 0 : index
    %29 = vector.load %arg3[%28, %c0_11, %c0_12] : memref<8x2x32xf32, #tpu.memory_space<vmem>>, vector<1x2x32xf32>
    %30 = vector.shape_cast %29 : vector<1x2x32xf32> to vector<2x32xf32>
    %31 = vector.shape_cast %27 : vector<2x32xf32> to vector<1x2x32xf32>
    tpu.vector_store %arg3[%28, %c0_11, %c0_12], %31 {strides = array<i32>} : memref<8x2x32xf32, #tpu.memory_space<vmem>>, vector<1x2x32xf32>,
    %c1_i32 = arith.constant 1 : i32
    %32 = arith.index_cast %c1_i32 : i32 to index
    %c0_13 = arith.constant 0 : index
    %c0_14 = arith.constant 0 : index
    %33 = vector.load %arg1[%32, %c0_13, %c0_14] : memref<8x2x128xbf16, #tpu.memory_space<vmem>>, vector<1x2x128xbf16>
    %34 = vector.shape_cast %33 : vector<1x2x128xbf16> to vector<2x128xbf16>
    %35 = arith.extf %34 : vector<2x128xbf16> to vector<2x128xf32>
    %36 = arith.truncf %27 : vector<2x32xf32> to vector<2x32xbf16>
    %cst_15 = arith.constant dense<0.000000e+00> : vector<2x128xf32>
    %37 = tpu.matmul %36, %3, %cst_15 {dimension_numbers = #tpu.dot_dimension_numbers<[1], [0], [0], [1], [0, 0, 1, 1], [], []>} : vector<2x32xbf16>, vector<32x128xbf16>, vector<2x128xf32> -> vector<2x128xf32>
    %38 = arith.addf %35, %37 : vector<2x128xf32>
    %39 = math.tanh %38 : vector<2x128xf32>
    %40 = vector.extract_strided_slice %39 {offsets = [0, 0], sizes = [2, 96], strides = [1, 1]} : vector<2x128xf32> to vector<2x96xf32>
    %cst_16 = arith.constant 5.000000e-01 : f32
    %41 = vector.broadcast %cst_16 : f32 to vector<2x96xf32>
    %42 = arith.mulf %41, %40 : vector<2x96xf32>
    %cst_17 = arith.constant 5.000000e-01 : f32
    %43 = vector.broadcast %cst_17 : f32 to vector<2x96xf32>
    %44 = arith.addf %42, %43 : vector<2x96xf32>
    %45 = vector.extract_strided_slice %44 {offsets = [0, 0], sizes = [2, 32], strides = [1, 1]} : vector<2x96xf32> to vector<2x32xf32>
    %46 = vector.extract_strided_slice %44 {offsets = [0, 32], sizes = [2, 32], strides = [1, 1]} : vector<2x96xf32> to vector<2x32xf32>
    %47 = vector.extract_strided_slice %44 {offsets = [0, 64], sizes = [2, 32], strides = [1, 1]} : vector<2x96xf32> to vector<2x32xf32>
    %48 = vector.extract_strided_slice %39 {offsets = [0, 96], sizes = [2, 32], strides = [1, 1]} : vector<2x128xf32> to vector<2x32xf32>
    %49 = arith.mulf %46, %25 : vector<2x32xf32>
    %50 = arith.mulf %45, %48 : vector<2x32xf32>
    %51 = arith.addf %49, %50 : vector<2x32xf32>
    %52 = math.tanh %51 : vector<2x32xf32>
    %53 = arith.mulf %47, %52 : vector<2x32xf32>
    %54 = arith.index_cast %c1_i32 : i32 to index
    %c0_18 = arith.constant 0 : index
    %c0_19 = arith.constant 0 : index
    %55 = vector.load %arg3[%54, %c0_18, %c0_19] : memref<8x2x32xf32, #tpu.memory_space<vmem>>, vector<1x2x32xf32>
    %56 = vector.shape_cast %55 : vector<1x2x32xf32> to vector<2x32xf32>
    %57 = vector.shape_cast %53 : vector<2x32xf32> to vector<1x2x32xf32>
    tpu.vector_store %arg3[%54, %c0_18, %c0_19], %57 {strides = array<i32>} : memref<8x2x32xf32, #tpu.memory_space<vmem>>, vector<1x2x32xf32>,
    %c2_i32 = arith.constant 2 : i32
    %58 = arith.index_cast %c2_i32 : i32 to index
    %c0_20 = arith.constant 0 : index
    %c0_21 = arith.constant 0 : index
    %59 = vector.load %arg1[%58, %c0_20, %c0_21] : memref<8x2x128xbf16, #tpu.memory_space<vmem>>, vector<1x2x128xbf16>
    %60 = vector.shape_cast %59 : vector<1x2x128xbf16> to vector<2x128xbf16>
    %61 = arith.extf %60 : vector<2x128xbf16> to vector<2x128xf32>
    %62 = arith.truncf %53 : vector<2x32xf32> to vector<2x32xbf16>
    %cst_22 = arith.constant dense<0.000000e+00> : vector<2x128xf32>
    %63 = tpu.matmul %62, %3, %cst_22 {dimension_numbers = #tpu.dot_dimension_numbers<[1], [0], [0], [1], [0, 0, 1, 1], [], []>} : vector<2x32xbf16>, vector<32x128xbf16>, vector<2x128xf32> -> vector<2x128xf32>
    %64 = arith.addf %61, %63 : vector<2x128xf32>
    %65 = math.tanh %64 : vector<2x128xf32>
    %66 = vector.extract_strided_slice %65 {offsets = [0, 0], sizes = [2, 96], strides = [1, 1]} : vector<2x128xf32> to vector<2x96xf32>
    %cst_23 = arith.constant 5.000000e-01 : f32
    %67 = vector.broadcast %cst_23 : f32 to vector<2x96xf32>
    %68 = arith.mulf %67, %66 : vector<2x96xf32>
    %cst_24 = arith.constant 5.000000e-01 : f32
    %69 = vector.broadcast %cst_24 : f32 to vector<2x96xf32>
    %70 = arith.addf %68, %69 : vector<2x96xf32>
    %71 = vector.extract_strided_slice %70 {offsets = [0, 0], sizes = [2, 32], strides = [1, 1]} : vector<2x96xf32> to vector<2x32xf32>
    %72 = vector.extract_strided_slice %70 {offsets = [0, 32], sizes = [2, 32], strides = [1, 1]} : vector<2x96xf32> to vector<2x32xf32>
    %73 = vector.extract_strided_slice %70 {offsets = [0, 64], sizes = [2, 32], strides = [1, 1]} : vector<2x96xf32> to vector<2x32xf32>
    %74 = vector.extract_strided_slice %65 {offsets = [0, 96], sizes = [2, 32], strides = [1, 1]} : vector<2x128xf32> to vector<2x32xf32>
    %75 = arith.mulf %72, %51 : vector<2x32xf32>
    %76 = arith.mulf %71, %74 : vector<2x32xf32>
    %77 = arith.addf %75, %76 : vector<2x32xf32>
    %78 = math.tanh %77 : vector<2x32xf32>
    %79 = arith.mulf %73, %78 : vector<2x32xf32>
    %80 = arith.index_cast %c2_i32 : i32 to index
    %c0_25 = arith.constant 0 : index
    %c0_26 = arith.constant 0 : index
    %81 = vector.load %arg3[%80, %c0_25, %c0_26] : memref<8x2x32xf32, #tpu.memory_space<vmem>>, vector<1x2x32xf32>
    %82 = vector.shape_cast %81 : vector<1x2x32xf32> to vector<2x32xf32>
    %83 = vector.shape_cast %79 : vector<2x32xf32> to vector<1x2x32xf32>
    tpu.vector_store %arg3[%80, %c0_25, %c0_26], %83 {strides = array<i32>} : memref<8x2x32xf32, #tpu.memory_space<vmem>>, vector<1x2x32xf32>,
    %c3_i32 = arith.constant 3 : i32
    %84 = arith.index_cast %c3_i32 : i32 to index
    %c0_27 = arith.constant 0 : index
    %c0_28 = arith.constant 0 : index
    %85 = vector.load %arg1[%84, %c0_27, %c0_28] : memref<8x2x128xbf16, #tpu.memory_space<vmem>>, vector<1x2x128xbf16>
    %86 = vector.shape_cast %85 : vector<1x2x128xbf16> to vector<2x128xbf16>
    %87 = arith.extf %86 : vector<2x128xbf16> to vector<2x128xf32>
    %88 = arith.truncf %79 : vector<2x32xf32> to vector<2x32xbf16>
    %cst_29 = arith.constant dense<0.000000e+00> : vector<2x128xf32>
    %89 = tpu.matmul %88, %3, %cst_29 {dimension_numbers = #tpu.dot_dimension_numbers<[1], [0], [0], [1], [0, 0, 1, 1], [], []>} : vector<2x32xbf16>, vector<32x128xbf16>, vector<2x128xf32> -> vector<2x128xf32>
    %90 = arith.addf %87, %89 : vector<2x128xf32>
    %91 = math.tanh %90 : vector<2x128xf32>
    %92 = vector.extract_strided_slice %91 {offsets = [0, 0], sizes = [2, 96], strides = [1, 1]} : vector<2x128xf32> to vector<2x96xf32>
    %cst_30 = arith.constant 5.000000e-01 : f32
    %93 = vector.broadcast %cst_30 : f32 to vector<2x96xf32>
    %94 = arith.mulf %93, %92 : vector<2x96xf32>
    %cst_31 = arith.constant 5.000000e-01 : f32
    %95 = vector.broadcast %cst_31 : f32 to vector<2x96xf32>
    %96 = arith.addf %94, %95 : vector<2x96xf32>
    %97 = vector.extract_strided_slice %96 {offsets = [0, 0], sizes = [2, 32], strides = [1, 1]} : vector<2x96xf32> to vector<2x32xf32>
    %98 = vector.extract_strided_slice %96 {offsets = [0, 32], sizes = [2, 32], strides = [1, 1]} : vector<2x96xf32> to vector<2x32xf32>
    %99 = vector.extract_strided_slice %96 {offsets = [0, 64], sizes = [2, 32], strides = [1, 1]} : vector<2x96xf32> to vector<2x32xf32>
    %100 = vector.extract_strided_slice %91 {offsets = [0, 96], sizes = [2, 32], strides = [1, 1]} : vector<2x128xf32> to vector<2x32xf32>
    %101 = arith.mulf %98, %77 : vector<2x32xf32>
    %102 = arith.mulf %97, %100 : vector<2x32xf32>
    %103 = arith.addf %101, %102 : vector<2x32xf32>
    %104 = math.tanh %103 : vector<2x32xf32>
    %105 = arith.mulf %99, %104 : vector<2x32xf32>
    %106 = arith.index_cast %c3_i32 : i32 to index
    %c0_32 = arith.constant 0 : index
    %c0_33 = arith.constant 0 : index
    %107 = vector.load %arg3[%106, %c0_32, %c0_33] : memref<8x2x32xf32, #tpu.memory_space<vmem>>, vector<1x2x32xf32>
    %108 = vector.shape_cast %107 : vector<1x2x32xf32> to vector<2x32xf32>
    %109 = vector.shape_cast %105 : vector<2x32xf32> to vector<1x2x32xf32>
    tpu.vector_store %arg3[%106, %c0_32, %c0_33], %109 {strides = array<i32>} : memref<8x2x32xf32, #tpu.memory_space<vmem>>, vector<1x2x32xf32>,
    %c4_i32 = arith.constant 4 : i32
    %110 = arith.index_cast %c4_i32 : i32 to index
    %c0_34 = arith.constant 0 : index
    %c0_35 = arith.constant 0 : index
    %111 = vector.load %arg1[%110, %c0_34, %c0_35] : memref<8x2x128xbf16, #tpu.memory_space<vmem>>, vector<1x2x128xbf16>
    %112 = vector.shape_cast %111 : vector<1x2x128xbf16> to vector<2x128xbf16>
    %113 = arith.extf %112 : vector<2x128xbf16> to vector<2x128xf32>
    %114 = arith.truncf %105 : vector<2x32xf32> to vector<2x32xbf16>
    %cst_36 = arith.constant dense<0.000000e+00> : vector<2x128xf32>
    %115 = tpu.matmul %114, %3, %cst_36 {dimension_numbers = #tpu.dot_dimension_numbers<[1], [0], [0], [1], [0, 0, 1, 1], [], []>} : vector<2x32xbf16>, vector<32x128xbf16>, vector<2x128xf32> -> vector<2x128xf32>
    %116 = arith.addf %113, %115 : vector<2x128xf32>
    %117 = math.tanh %116 : vector<2x128xf32>
    %118 = vector.extract_strided_slice %117 {offsets = [0, 0], sizes = [2, 96], strides = [1, 1]} : vector<2x128xf32> to vector<2x96xf32>
    %cst_37 = arith.constant 5.000000e-01 : f32
    %119 = vector.broadcast %cst_37 : f32 to vector<2x96xf32>
    %120 = arith.mulf %119, %118 : vector<2x96xf32>
    %cst_38 = arith.constant 5.000000e-01 : f32
    %121 = vector.broadcast %cst_38 : f32 to vector<2x96xf32>
    %122 = arith.addf %120, %121 : vector<2x96xf32>
    %123 = vector.extract_strided_slice %122 {offsets = [0, 0], sizes = [2, 32], strides = [1, 1]} : vector<2x96xf32> to vector<2x32xf32>
    %124 = vector.extract_strided_slice %122 {offsets = [0, 32], sizes = [2, 32], strides = [1, 1]} : vector<2x96xf32> to vector<2x32xf32>
    %125 = vector.extract_strided_slice %122 {offsets = [0, 64], sizes = [2, 32], strides = [1, 1]} : vector<2x96xf32> to vector<2x32xf32>
    %126 = vector.extract_strided_slice %117 {offsets = [0, 96], sizes = [2, 32], strides = [1, 1]} : vector<2x128xf32> to vector<2x32xf32>
    %127 = arith.mulf %124, %103 : vector<2x32xf32>
    %128 = arith.mulf %123, %126 : vector<2x32xf32>
    %129 = arith.addf %127, %128 : vector<2x32xf32>
    %130 = math.tanh %129 : vector<2x32xf32>
    %131 = arith.mulf %125, %130 : vector<2x32xf32>
    %132 = arith.index_cast %c4_i32 : i32 to index
    %c0_39 = arith.constant 0 : index
    %c0_40 = arith.constant 0 : index
    %133 = vector.load %arg3[%132, %c0_39, %c0_40] : memref<8x2x32xf32, #tpu.memory_space<vmem>>, vector<1x2x32xf32>
    %134 = vector.shape_cast %133 : vector<1x2x32xf32> to vector<2x32xf32>
    %135 = vector.shape_cast %131 : vector<2x32xf32> to vector<1x2x32xf32>
    tpu.vector_store %arg3[%132, %c0_39, %c0_40], %135 {strides = array<i32>} : memref<8x2x32xf32, #tpu.memory_space<vmem>>, vector<1x2x32xf32>,
    %c5_i32 = arith.constant 5 : i32
    %136 = arith.index_cast %c5_i32 : i32 to index
    %c0_41 = arith.constant 0 : index
    %c0_42 = arith.constant 0 : index
    %137 = vector.load %arg1[%136, %c0_41, %c0_42] : memref<8x2x128xbf16, #tpu.memory_space<vmem>>, vector<1x2x128xbf16>
    %138 = vector.shape_cast %137 : vector<1x2x128xbf16> to vector<2x128xbf16>
    %139 = arith.extf %138 : vector<2x128xbf16> to vector<2x128xf32>
    %140 = arith.truncf %131 : vector<2x32xf32> to vector<2x32xbf16>
    %cst_43 = arith.constant dense<0.000000e+00> : vector<2x128xf32>
    %141 = tpu.matmul %140, %3, %cst_43 {dimension_numbers = #tpu.dot_dimension_numbers<[1], [0], [0], [1], [0, 0, 1, 1], [], []>} : vector<2x32xbf16>, vector<32x128xbf16>, vector<2x128xf32> -> vector<2x128xf32>
    %142 = arith.addf %139, %141 : vector<2x128xf32>
    %143 = math.tanh %142 : vector<2x128xf32>
    %144 = vector.extract_strided_slice %143 {offsets = [0, 0], sizes = [2, 96], strides = [1, 1]} : vector<2x128xf32> to vector<2x96xf32>
    %cst_44 = arith.constant 5.000000e-01 : f32
    %145 = vector.broadcast %cst_44 : f32 to vector<2x96xf32>
    %146 = arith.mulf %145, %144 : vector<2x96xf32>
    %cst_45 = arith.constant 5.000000e-01 : f32
    %147 = vector.broadcast %cst_45 : f32 to vector<2x96xf32>
    %148 = arith.addf %146, %147 : vector<2x96xf32>
    %149 = vector.extract_strided_slice %148 {offsets = [0, 0], sizes = [2, 32], strides = [1, 1]} : vector<2x96xf32> to vector<2x32xf32>
    %150 = vector.extract_strided_slice %148 {offsets = [0, 32], sizes = [2, 32], strides = [1, 1]} : vector<2x96xf32> to vector<2x32xf32>
    %151 = vector.extract_strided_slice %148 {offsets = [0, 64], sizes = [2, 32], strides = [1, 1]} : vector<2x96xf32> to vector<2x32xf32>
    %152 = vector.extract_strided_slice %143 {offsets = [0, 96], sizes = [2, 32], strides = [1, 1]} : vector<2x128xf32> to vector<2x32xf32>
    %153 = arith.mulf %150, %129 : vector<2x32xf32>
    %154 = arith.mulf %149, %152 : vector<2x32xf32>
    %155 = arith.addf %153, %154 : vector<2x32xf32>
    %156 = math.tanh %155 : vector<2x32xf32>
    %157 = arith.mulf %151, %156 : vector<2x32xf32>
    %158 = arith.index_cast %c5_i32 : i32 to index
    %c0_46 = arith.constant 0 : index
    %c0_47 = arith.constant 0 : index
    %159 = vector.load %arg3[%158, %c0_46, %c0_47] : memref<8x2x32xf32, #tpu.memory_space<vmem>>, vector<1x2x32xf32>
    %160 = vector.shape_cast %159 : vector<1x2x32xf32> to vector<2x32xf32>
    %161 = vector.shape_cast %157 : vector<2x32xf32> to vector<1x2x32xf32>
    tpu.vector_store %arg3[%158, %c0_46, %c0_47], %161 {strides = array<i32>} : memref<8x2x32xf32, #tpu.memory_space<vmem>>, vector<1x2x32xf32>,
    %c6_i32 = arith.constant 6 : i32
    %162 = arith.index_cast %c6_i32 : i32 to index
    %c0_48 = arith.constant 0 : index
    %c0_49 = arith.constant 0 : index
    %163 = vector.load %arg1[%162, %c0_48, %c0_49] : memref<8x2x128xbf16, #tpu.memory_space<vmem>>, vector<1x2x128xbf16>
    %164 = vector.shape_cast %163 : vector<1x2x128xbf16> to vector<2x128xbf16>
    %165 = arith.extf %164 : vector<2x128xbf16> to vector<2x128xf32>
    %166 = arith.truncf %157 : vector<2x32xf32> to vector<2x32xbf16>
    %cst_50 = arith.constant dense<0.000000e+00> : vector<2x128xf32>
    %167 = tpu.matmul %166, %3, %cst_50 {dimension_numbers = #tpu.dot_dimension_numbers<[1], [0], [0], [1], [0, 0, 1, 1], [], []>} : vector<2x32xbf16>, vector<32x128xbf16>, vector<2x128xf32> -> vector<2x128xf32>
    %168 = arith.addf %165, %167 : vector<2x128xf32>
    %169 = math.tanh %168 : vector<2x128xf32>
    %170 = vector.extract_strided_slice %169 {offsets = [0, 0], sizes = [2, 96], strides = [1, 1]} : vector<2x128xf32> to vector<2x96xf32>
    %cst_51 = arith.constant 5.000000e-01 : f32
    %171 = vector.broadcast %cst_51 : f32 to vector<2x96xf32>
    %172 = arith.mulf %171, %170 : vector<2x96xf32>
    %cst_52 = arith.constant 5.000000e-01 : f32
    %173 = vector.broadcast %cst_52 : f32 to vector<2x96xf32>
    %174 = arith.addf %172, %173 : vector<2x96xf32>
    %175 = vector.extract_strided_slice %174 {offsets = [0, 0], sizes = [2, 32], strides = [1, 1]} : vector<2x96xf32> to vector<2x32xf32>
    %176 = vector.extract_strided_slice %174 {offsets = [0, 32], sizes = [2, 32], strides = [1, 1]} : vector<2x96xf32> to vector<2x32xf32>
    %177 = vector.extract_strided_slice %174 {offsets = [0, 64], sizes = [2, 32], strides = [1, 1]} : vector<2x96xf32> to vector<2x32xf32>
    %178 = vector.extract_strided_slice %169 {offsets = [0, 96], sizes = [2, 32], strides = [1, 1]} : vector<2x128xf32> to vector<2x32xf32>
    %179 = arith.mulf %176, %155 : vector<2x32xf32>
    %180 = arith.mulf %175, %178 : vector<2x32xf32>
    %181 = arith.addf %179, %180 : vector<2x32xf32>
    %182 = math.tanh %181 : vector<2x32xf32>
    %183 = arith.mulf %177, %182 : vector<2x32xf32>
    %184 = arith.index_cast %c6_i32 : i32 to index
    %c0_53 = arith.constant 0 : index
    %c0_54 = arith.constant 0 : index
    %185 = vector.load %arg3[%184, %c0_53, %c0_54] : memref<8x2x32xf32, #tpu.memory_space<vmem>>, vector<1x2x32xf32>
    %186 = vector.shape_cast %185 : vector<1x2x32xf32> to vector<2x32xf32>
    %187 = vector.shape_cast %183 : vector<2x32xf32> to vector<1x2x32xf32>
    tpu.vector_store %arg3[%184, %c0_53, %c0_54], %187 {strides = array<i32>} : memref<8x2x32xf32, #tpu.memory_space<vmem>>, vector<1x2x32xf32>,
    %c7_i32 = arith.constant 7 : i32
    %188 = arith.index_cast %c7_i32 : i32 to index
    %c0_55 = arith.constant 0 : index
    %c0_56 = arith.constant 0 : index
    %189 = vector.load %arg1[%188, %c0_55, %c0_56] : memref<8x2x128xbf16, #tpu.memory_space<vmem>>, vector<1x2x128xbf16>
    %190 = vector.shape_cast %189 : vector<1x2x128xbf16> to vector<2x128xbf16>
    %191 = arith.extf %190 : vector<2x128xbf16> to vector<2x128xf32>
    %192 = arith.truncf %183 : vector<2x32xf32> to vector<2x32xbf16>
    %cst_57 = arith.constant dense<0.000000e+00> : vector<2x128xf32>
    %193 = tpu.matmul %192, %3, %cst_57 {dimension_numbers = #tpu.dot_dimension_numbers<[1], [0], [0], [1], [0, 0, 1, 1], [], []>} : vector<2x32xbf16>, vector<32x128xbf16>, vector<2x128xf32> -> vector<2x128xf32>
    %194 = arith.addf %191, %193 : vector<2x128xf32>
    %195 = math.tanh %194 : vector<2x128xf32>
    %196 = vector.extract_strided_slice %195 {offsets = [0, 0], sizes = [2, 96], strides = [1, 1]} : vector<2x128xf32> to vector<2x96xf32>
    %cst_58 = arith.constant 5.000000e-01 : f32
    %197 = vector.broadcast %cst_58 : f32 to vector<2x96xf32>
    %198 = arith.mulf %197, %196 : vector<2x96xf32>
    %cst_59 = arith.constant 5.000000e-01 : f32
    %199 = vector.broadcast %cst_59 : f32 to vector<2x96xf32>
    %200 = arith.addf %198, %199 : vector<2x96xf32>
    %201 = vector.extract_strided_slice %200 {offsets = [0, 0], sizes = [2, 32], strides = [1, 1]} : vector<2x96xf32> to vector<2x32xf32>
    %202 = vector.extract_strided_slice %200 {offsets = [0, 32], sizes = [2, 32], strides = [1, 1]} : vector<2x96xf32> to vector<2x32xf32>
    %203 = vector.extract_strided_slice %200 {offsets = [0, 64], sizes = [2, 32], strides = [1, 1]} : vector<2x96xf32> to vector<2x32xf32>
    %204 = vector.extract_strided_slice %195 {offsets = [0, 96], sizes = [2, 32], strides = [1, 1]} : vector<2x128xf32> to vector<2x32xf32>
    %205 = arith.mulf %202, %181 : vector<2x32xf32>
    %206 = arith.mulf %201, %204 : vector<2x32xf32>
    %207 = arith.addf %205, %206 : vector<2x32xf32>
    %208 = math.tanh %207 : vector<2x32xf32>
    %209 = arith.mulf %203, %208 : vector<2x32xf32>
    %210 = arith.index_cast %c7_i32 : i32 to index
    %c0_60 = arith.constant 0 : index
    %c0_61 = arith.constant 0 : index
    %211 = vector.load %arg3[%210, %c0_60, %c0_61] : memref<8x2x32xf32, #tpu.memory_space<vmem>>, vector<1x2x32xf32>
    %212 = vector.shape_cast %211 : vector<1x2x32xf32> to vector<2x32xf32>
    %213 = vector.shape_cast %209 : vector<2x32xf32> to vector<1x2x32xf32>
    tpu.vector_store %arg3[%210, %c0_60, %c0_61], %213 {strides = array<i32>} : memref<8x2x32xf32, #tpu.memory_space<vmem>>, vector<1x2x32xf32>,
    %c8_i32 = arith.constant 8 : i32
    %c0_62 = arith.constant 0 : index
    %c0_63 = arith.constant 0 : index
    %214 = vector.load %arg4[%c0_62, %c0_63] : memref<2x32xf32, #tpu.memory_space<vmem>>, vector<2x32xf32>
    tpu.vector_store %arg4[%c0_62, %c0_63], %209 {strides = array<i32>} : memref<2x32xf32, #tpu.memory_space<vmem>>, vector<2x32xf32>,
    %c0_64 = arith.constant 0 : index
    %c0_65 = arith.constant 0 : index
    %215 = vector.load %arg5[%c0_64, %c0_65] : memref<2x32xf32, #tpu.memory_space<vmem>>, vector<2x32xf32>
    tpu.vector_store %arg5[%c0_64, %c0_65], %207 {strides = array<i32>} : memref<2x32xf32, #tpu.memory_space<vmem>>, vector<2x32xf32>,
    return
  }
  func.func @transform_0(%arg0: i32) -> (i32, i32, i32) {
    %c0_i32 = arith.constant 0 : i32
    %c0_i32_0 = arith.constant 0 : i32
    %c0_i32_1 = arith.constant 0 : i32
    return %arg0, %c0_i32, %c0_i32_0 : i32, i32, i32
  }
  func.func @transform_1(%arg0: i32) -> (i32, i32) {
    %c0_i32 = arith.constant 0 : i32
    %c0_i32_0 = arith.constant 0 : i32
    %c0_i32_1 = arith.constant 0 : i32
    return %c0_i32, %c0_i32_0 : i32, i32
  }
  func.func @transform_2(%arg0: i32) -> (i32, i32, i32) {
    %c0_i32 = arith.constant 0 : i32
    %c0_i32_0 = arith.constant 0 : i32
    %c0_i32_1 = arith.constant 0 : i32
    return %arg0, %c0_i32, %c0_i32_0 : i32, i32, i32
  }
}

</mosaic_0001>

<bundles_post_ra>
// kernel: subj_lstm_forward.1
= control target key start
LH: loop header
LB: loop body
LE: loop exit
PB: predicated region body
PF: predicated region fallthrough
CT: control target
= control target key end

     0   :  { %vm16_vm0 = vcmask 254976   ;;  %v887_v0 = vmov 0.0   ;;  %vm888_vm1 = vmmov 0   ;;  %vm40_vm2 = vcmask 261120   ;;  %s889_s14 = smov 32   ;;  %s890_s15 = smov 64   ;;  %s1106_s1 = inlined_call_operand.vmem [shape: bf16[32,128], index: 1, kind: input, shape index: {}]   ;;  %s1107_s0 = inlined_call_operand.vmem [shape: bf16[8,2,128], index: 0, kind: input, shape index: {}]   ;;  %s1108_s2 = inlined_call_operand.vmem [shape: f32[8,2,32], index: 2, kind: output, shape index: {}]  }
   0x1   :  { %783 = vmatprep.subr.bf16.mxu0 %v887_v0  ;;  %v912_v1 = vld [vmem:[%s1106_s1 + $0x8] sm:$0xff]   ;;  %787 = vmatprep.mubr.msk.bf16.mxu0 %vm888_vm1, %v887_v0  ;;  %17 = vst.msk [vmem:[#allocation2] sm:$0x3] %vm16_vm0, %v887_v0  ;;  %18 = vst.msk [vmem:[#allocation3] sm:$0x3] %vm16_vm0, %v887_v0  ;;  %v927_v2 = vld [vmem:[%s1106_s1] sm:$0xff]  }
   0x2   :  { %791 = vmatprep.subr.bf16.mxu1 %v887_v0  ;;  %795 = vmatprep.mubr.msk.bf16.mxu1 %vm888_vm1, %v887_v0  ;;  %v25_v5 = vld [vmem:[%s1107_s0] sm:$0x1]  ;;  %v738_v27 = vld [vmem:[%s1107_s0 + $0x1] sm:$0x1]  ;;  %v741_v47 = vld [vmem:[%s1107_s0 + $0x2] sm:$0x1] }
   0x3   :  { %784 = vmatpush3.bf16.msra.mxu0 %v912_v1  ;;  %792 = vmatpush3.bf16.msra.mxu1 %v912_v1  ;;  %v26_v6 = vunpack.c.l.bf16 %v25_v5  ;;  %v131_v28 = vunpack.c.l.bf16 %v738_v27  ;;  %v215_v48 = vunpack.c.l.bf16 %v741_v47  ;;  %v747_v27 = vld [vmem:[%s1107_s0 + $0x4] sm:$0x1]  ;;  %s892_s3 = smov 96  }
   0x4   :  { %785 = vmatprep.subr.bf16.mxu0 %v887_v0  ;;  %793 = vmatprep.subr.bf16.mxu1 %v887_v0 }
   0x7   :  { %786 = vmatpush3.bf16.msra.mxu0 %v927_v2  ;;  %794 = vmatpush3.bf16.msra.mxu1 %v927_v2 }
   0x8   :  { %v23_v3 = vld [vmem:[#allocation2] sm:$0x3]  ;;  %799 = vmatprep.subr.bf16.mxu0 %v887_v0  ;;  %807 = vmatprep.subr.bf16.mxu1 %v887_v0  ;;  %v737_v13 = vld.sshfl [vmem:[#allocation3] sm:$0x3 pattern:$0x76325410] }
   0x9   :  { %v27_v4 = vpack.c.bf16 %v23_v3, %v23_v3 }
   0xb   :  { %788 = vmatmul.mubr.msk.bf16.vlgmr.msra.gmra.mxu0 %vm40_vm2, %v27_v4 }
   0xc   :  { %800 = vmatpush3.bf16.msra.mxu0 %v912_v1  ;;  %803 = vmatprep.mubr.msk.bf16.mxu0 %vm888_vm1, %v887_v0 }
   0xd   :  { %801 = vmatprep.subr.bf16.mxu0 %v887_v0 }
  0x10   :  { %802 = vmatpush3.bf16.msra.mxu0 %v927_v2 }
  0x11   :  { %815 = vmatprep.subr.bf16.mxu0 %v887_v0 }
  0xcb   :  { %v78_v7 = vpop.f32.mrf.mxu0 }
  0xcc   :  { %v84_v8 = vadd.f32 %v78_v7, %v26_v6  ;;  %v744_v6 = vld [vmem:[%s1107_s0 + $0x3] sm:$0x1] }
  0xcd   :  { %v789_v9 = vpop.f32.mrf.mxu0  ;;  %v299_v7 = vunpack.c.l.bf16 %v744_v6 }
  0xce   :  { %855 = vtanh.f32 %v84_v8 }
  0xcf   :  { %v81_v10 = vpop.f32.mrf.mxu0 }
  0xd1   :  { %v790_v11 = vpop.f32.mrf.mxu0 }
  0xdb   :  { %v856_v12 = vpop.eup %855 }
  0xdc   :  { %101 = vrot.lane.b32.xlu0 %v856_v12, %s889_s14  ;;  %v86_v14 = vmul.f32 0.5, %v856_v12 }
  0xde   :  { %v87_v15 = vadd.f32 0.5, %v86_v14 }
  0xe0   :  { %96 = vrot.lane.b32.xlu0 %v737_v13, %s889_s14 }
 0x14e   :  { %v102_v16 = vpop.permute.xlu0 %101 }
 0x14f   :  { %v104_v17 = vmul.f32 %v102_v16, %v87_v15 }
 0x151   :  { %106 = vrot.lane.b32.xlu1 %v104_v17, %s889_s14 }
 0x152   :  { %v97_v18 = vpop.permute.xlu0 %96 }
 0x153   :  { %v99_v19 = vmul.f32 %v97_v18, %v87_v15 }
 0x1c3   :  { %v107_v20 = vpop.permute.xlu1 %106 }
 0x1c4   :  { %v109_v21 = vadd.f32 %v107_v20, %v99_v19 }
 0x1c6   :  { %857 = vtanh.f32 %v109_v21 }
 0x1d3   :  { %v858_v22 = vpop.eup %857 }
 0x1d4   :  { %112 = vrot.lane.b32.xlu1 %v858_v22, %s889_s14 }
 0x246   :  { %v113_v23 = vpop.permute.xlu1 %112 }
 0x247   :  { %v950_v24 = vmul.f32 %v113_v23, %v87_v15 }
 0x249   :  { %v132_v25 = vpack.c.bf16 %v950_v24, %v950_v24 }
 0x24b   :  { %134 = vrot.lane.b32.xlu0 %v132_v25, %s890_s15 }
 0x2bd   :  { %v135_v26 = vpop.permute.xlu0 %134 }
 0x2be   :  { %796 = vmatmul.mubr.msk.bf16.vlgmr.msra.gmra.mxu1 %vm40_vm2, %v135_v26 }
 0x2bf   :  { %808 = vmatpush3.bf16.msra.mxu1 %v912_v1  ;;  %811 = vmatprep.mubr.msk.bf16.mxu1 %vm888_vm1, %v887_v0 }
 0x2c0   :  { %809 = vmatprep.subr.bf16.mxu1 %v887_v0 }
 0x2c3   :  { %810 = vmatpush3.bf16.msra.mxu1 %v927_v2 }
 0x2c4   :  { %823 = vmatprep.subr.bf16.mxu1 %v887_v0 }
 0x37e   :  { %v173_v29 = vpop.f32.mrf.mxu1 }
 0x37f   :  { %v179_v30 = vadd.f32 %v173_v29, %v131_v28  ;;  %v383_v28 = vunpack.c.l.bf16 %v747_v27  ;;  %v756_v27 = vld [vmem:[%s1107_s0 + $0x7] sm:$0x1] }
 0x380   :  { %v797_v31 = vpop.f32.mrf.mxu1 }
 0x381   :  { %859 = vtanh.f32 %v179_v30 }
 0x382   :  { %v176_v32 = vpop.f32.mrf.mxu1 }
 0x384   :  { %v798_v33 = vpop.f32.mrf.mxu1 }
 0x38e   :  { %v860_v34 = vpop.eup %859 }
 0x38f   :  { %185 = vrot.lane.b32.xlu1 %v860_v34, %s889_s14  ;;  %v181_v35 = vmul.f32 0.5, %v860_v34 }
 0x391   :  { %v182_v36 = vadd.f32 0.5, %v181_v35 }
 0x393   :  { %v183_v39 = vmul.f32 %v182_v36, %v109_v21 }
 0x401   :  { %v186_v37 = vpop.permute.xlu1 %185 }
 0x402   :  { %v188_v38 = vmul.f32 %v186_v37, %v182_v36 }
 0x404   :  { %190 = vrot.lane.b32.xlu0 %v188_v38, %s889_s14 }
 0x476   :  { %v191_v40 = vpop.permute.xlu0 %190 }
 0x477   :  { %v193_v41 = vadd.f32 %v191_v40, %v183_v39 }
 0x479   :  { %861 = vtanh.f32 %v193_v41 }
 0x486   :  { %v862_v42 = vpop.eup %861 }
 0x487   :  { %196 = vrot.lane.b32.xlu1 %v862_v42, %s889_s14 }
 0x4f9   :  { %v197_v43 = vpop.permute.xlu1 %196 }
 0x4fa   :  { %v968_v44 = vmul.f32 %v197_v43, %v182_v36 }
 0x4fc   :  { %v216_v45 = vpack.c.bf16 %v968_v44, %v968_v44 }
 0x4fe   :  { %218 = vrot.lane.b32.xlu0 %v216_v45, %s890_s15 }
 0x570   :  { %v219_v46 = vpop.permute.xlu0 %218 }
 0x571   :  { %804 = vmatmul.mubr.msk.bf16.vlgmr.msra.gmra.mxu0 %vm40_vm2, %v219_v46 }
 0x572   :  { %816 = vmatpush3.bf16.msra.mxu0 %v912_v1  ;;  %819 = vmatprep.mubr.msk.bf16.mxu0 %vm888_vm1, %v887_v0 }
 0x573   :  { %817 = vmatprep.subr.bf16.mxu0 %v887_v0 }
 0x576   :  { %818 = vmatpush3.bf16.msra.mxu0 %v927_v2 }
 0x577   :  { %831 = vmatprep.subr.bf16.mxu0 %v887_v0 }
 0x631   :  { %v257_v49 = vpop.f32.mrf.mxu0 }
 0x632   :  { %v263_v50 = vadd.f32 %v257_v49, %v215_v48  ;;  %v750_v48 = vld [vmem:[%s1107_s0 + $0x5] sm:$0x1] }
 0x633   :  { %v805_v51 = vpop.f32.mrf.mxu0  ;;  %v467_v49 = vunpack.c.l.bf16 %v750_v48 }
 0x634   :  { %863 = vtanh.f32 %v263_v50 }
 0x635   :  { %v260_v52 = vpop.f32.mrf.mxu0 }
 0x637   :  { %v806_v53 = vpop.f32.mrf.mxu0 }
 0x641   :  { %v864_v54 = vpop.eup %863 }
 0x642   :  { %269 = vrot.lane.b32.xlu1 %v864_v54, %s889_s14  ;;  %v265_v55 = vmul.f32 0.5, %v864_v54 }
 0x644   :  { %v266_v56 = vadd.f32 0.5, %v265_v55 }
 0x646   :  { %v267_v59 = vmul.f32 %v266_v56, %v193_v41 }
 0x6b4   :  { %v270_v57 = vpop.permute.xlu1 %269 }
 0x6b5   :  { %v272_v58 = vmul.f32 %v270_v57, %v266_v56 }
 0x6b7   :  { %274 = vrot.lane.b32.xlu0 %v272_v58, %s889_s14 }
 0x729   :  { %v275_v60 = vpop.permute.xlu0 %274 }
 0x72a   :  { %v277_v61 = vadd.f32 %v275_v60, %v267_v59 }
 0x72c   :  { %865 = vtanh.f32 %v277_v61 }
 0x739   :  { %v866_v62 = vpop.eup %865 }
 0x73a   :  { %280 = vrot.lane.b32.xlu1 %v866_v62, %s889_s14 }
 0x7ac   :  { %v281_v63 = vpop.permute.xlu1 %280 }
 0x7ad   :  { %v986_v3 = vmul.f32 %v281_v63, %v266_v56 }
 0x7af   :  { %v300_v4 = vpack.c.bf16 %v986_v3, %v986_v3 }
 0x7b1   :  { %302 = vrot.lane.b32.xlu0 %v300_v4, %s890_s15 }
 0x823   :  { %v303_v5 = vpop.permute.xlu0 %302 }
 0x824   :  { %812 = vmatmul.mubr.msk.bf16.vlgmr.msra.gmra.mxu1 %vm40_vm2, %v303_v5  ;;  %v753_v5 = vld [vmem:[%s1107_s0 + $0x6] sm:$0x1] }
 0x825   :  { %824 = vmatpush3.bf16.msra.mxu1 %v912_v1  ;;  %827 = vmatprep.mubr.msk.bf16.mxu1 %vm888_vm1, %v887_v0  ;;  %v551_v6 = vunpack.c.l.bf16 %v753_v5 }
 0x826   :  { %825 = vmatprep.subr.bf16.mxu1 %v887_v0 }
 0x829   :  { %826 = vmatpush3.bf16.msra.mxu1 %v927_v2 }
 0x82a   :  { %839 = vmatprep.subr.bf16.mxu1 %v887_v0 }
 0x8e4   :  { %v341_v8 = vpop.f32.mrf.mxu1 }
 0x8e5   :  { %v347_v9 = vadd.f32 %v341_v8, %v299_v7 }
 0x8e6   :  { %v813_v10 = vpop.f32.mrf.mxu1 }
 0x8e7   :  { %867 = vtanh.f32 %v347_v9 }
 0x8e8   :  { %v344_v11 = vpop.f32.mrf.mxu1 }
 0x8ea   :  { %v814_v12 = vpop.f32.mrf.mxu1 }
 0x8f4   :  { %v868_v13 = vpop.eup %867 }
 0x8f5   :  { %353 = vrot.lane.b32.xlu1 %v868_v13, %s889_s14  ;;  %v349_v14 = vmul.f32 0.5, %v868_v13 }
 0x8f7   :  { %v350_v15 = vadd.f32 0.5, %v349_v14 }
 0x8f9   :  { %v351_v18 = vmul.f32 %v350_v15, %v277_v61 }
 0x967   :  { %v354_v16 = vpop.permute.xlu1 %353 }
 0x968   :  { %v356_v17 = vmul.f32 %v354_v16, %v350_v15 }
 0x96a   :  { %358 = vrot.lane.b32.xlu0 %v356_v17, %s889_s14 }
 0x9dc   :  { %v359_v19 = vpop.permute.xlu0 %358 }
 0x9dd   :  { %v361_v20 = vadd.f32 %v359_v19, %v351_v18 }
 0x9df   :  { %869 = vtanh.f32 %v361_v20 }
 0x9ec   :  { %v870_v21 = vpop.eup %869 }
 0x9ed   :  { %364 = vrot.lane.b32.xlu1 %v870_v21, %s889_s14 }
 0xa5f   :  { %v365_v22 = vpop.permute.xlu1 %364 }
 0xa60   :  { %v1004_v23 = vmul.f32 %v365_v22, %v350_v15 }
 0xa62   :  { %v384_v25 = vpack.c.bf16 %v1004_v23, %v1004_v23 }
 0xa64   :  { %386 = vrot.lane.b32.xlu0 %v384_v25, %s890_s15 }
 0xad6   :  { %v387_v26 = vpop.permute.xlu0 %386 }
 0xad7   :  { %820 = vmatmul.mubr.msk.bf16.vlgmr.msra.gmra.mxu0 %vm40_vm2, %v387_v26 }
 0xad8   :  { %832 = vmatpush3.bf16.msra.mxu0 %v912_v1  ;;  %835 = vmatprep.mubr.msk.bf16.mxu0 %vm888_vm1, %v887_v0 }
 0xad9   :  { %833 = vmatprep.subr.bf16.mxu0 %v887_v0 }
 0xadc   :  { %834 = vmatpush3.bf16.msra.mxu0 %v927_v2 }
 0xb97   :  { %v425_v29 = vpop.f32.mrf.mxu0 }
 0xb98   :  { %v431_v30 = vadd.f32 %v425_v29, %v383_v28  ;;  %v635_v28 = vunpack.c.l.bf16 %v756_v27 }
 0xb99   :  { %v821_v31 = vpop.f32.mrf.mxu0 }
 0xb9a   :  { %871 = vtanh.f32 %v431_v30 }
 0xb9b   :  { %v428_v32 = vpop.f32.mrf.mxu0 }
 0xb9d   :  { %v822_v33 = vpop.f32.mrf.mxu0 }
 0xba7   :  { %v872_v34 = vpop.eup %871 }
 0xba8   :  { %437 = vrot.lane.b32.xlu1 %v872_v34, %s889_s14  ;;  %v433_v35 = vmul.f32 0.5, %v872_v34 }
 0xbaa   :  { %v434_v36 = vadd.f32 0.5, %v433_v35  ;;  %v891_v35 = vmov 1983009808  }
 0xbac   :  { %v435_v39 = vmul.f32 %v434_v36, %v361_v20 }
 0xc1a   :  { %v438_v37 = vpop.permute.xlu1 %437 }
 0xc1b   :  { %v440_v38 = vmul.f32 %v438_v37, %v434_v36  ;;  %v120_v37 = vlaneseq }
 0xc1d   :  { %442 = vrot.lane.b32.xlu0 %v440_v38, %s889_s14 }
 0xc8f   :  { %v443_v40 = vpop.permute.xlu0 %442 }
 0xc90   :  { %v445_v41 = vadd.f32 %v443_v40, %v435_v39  ;;  %v121_v40 = vshrl.u32 %v120_v37, 7 }
 0xc92   :  { %873 = vtanh.f32 %v445_v41 }
 0xc9f   :  { %v874_v42 = vpop.eup %873 }
 0xca0   :  { %448 = vrot.lane.b32.xlu1 %v874_v42, %s889_s14 }
 0xd12   :  { %v449_v43 = vpop.permute.xlu1 %448 }
 0xd13   :  { %v1021_v45 = vmul.f32 %v449_v43, %v434_v36  ;;  %v118_v36 = vunpack.c.l.s4 %v891_v35 }
 0xd15   :  { %v468_v46 = vpack.c.bf16 %v1021_v45, %v1021_v45  ;;  %v119_v39 = vunpack.c.0.s8 %v118_v36 }
 0xd17   :  { %470 = vrot.lane.b32.xlu0 %v468_v46, %s890_s15  ;;  %v122_v43 = vsub.s32 %v119_v39, %v121_v40 }
 0xd19   :  { %v291_v48 = vrot.slane %v986_v3, %v122_v43 }
 0xd89   :  { %v471_v47 = vpop.permute.xlu0 %470 }
 0xd8a   :  { %828 = vmatmul.mubr.msk.bf16.vlgmr.msra.gmra.mxu1 %vm40_vm2, %v471_v47  ;;  %v123_v47 = vrot.slane %v950_v24, %v122_v43 }
 0xd8b   :  { %840 = vmatpush3.bf16.msra.mxu1 %v912_v1  ;;  %843 = vmatprep.mubr.msk.bf16.mxu1 %vm888_vm1, %v887_v0 }
 0xd8c   :  { %841 = vmatprep.subr.bf16.mxu1 %v887_v0 }
 0xd8f   :  { %842 = vmatpush3.bf16.msra.mxu1 %v927_v2 }
 0xe4a   :  { %v509_v50 = vpop.f32.mrf.mxu1 }
 0xe4b   :  { %v515_v51 = vadd.f32 %v509_v50, %v467_v49  ;;  %v459_v49 = vrot.slane %v1021_v45, %v122_v43 }
 0xe4c   :  { %v829_v52 = vpop.f32.mrf.mxu1 }
 0xe4d   :  { %875 = vtanh.f32 %v515_v51 }
 0xe4e   :  { %v512_v53 = vpop.f32.mrf.mxu1 }
 0xe50   :  { %v830_v54 = vpop.f32.mrf.mxu1 }
 0xe5a   :  { %v876_v55 = vpop.eup %875 }
 0xe5b   :  { %521 = vrot.lane.b32.xlu1 %v876_v55, %s889_s14  ;;  %v517_v1 = vmul.f32 0.5, %v876_v55 }
 0xe5d   :  { %v518_v56 = vadd.f32 0.5, %v517_v1 }
 0xe5f   :  { %v519_v2 = vmul.f32 %v518_v56, %v445_v41 }
 0xecd   :  { %v522_v57 = vpop.permute.xlu1 %521 }
 0xece   :  { %v524_v0 = vmul.f32 %v522_v57, %v518_v56  ;;  %v375_v57 = vrot.slane %v1004_v23, %v122_v43 }
 0xed0   :  { %526 = vrot.lane.b32.xlu0 %v524_v0, %s889_s14 }
 0xf42   :  { %v527_v58 = vpop.permute.xlu0 %526 }
 0xf43   :  { %v529_v59 = vadd.f32 %v527_v58, %v519_v2 }
 0xf45   :  { %877 = vtanh.f32 %v529_v59 }
 0xf52   :  { %v878_v60 = vpop.eup %877 }
 0xf53   :  { %532 = vrot.lane.b32.xlu1 %v878_v60, %s889_s14 }
 0xfc5   :  { %v533_v61 = vpop.permute.xlu1 %532 }
 0xfc6   :  { %v1038_v62 = vmul.f32 %v533_v61, %v518_v56  ;;  %v207_v56 = vrot.slane %v968_v44, %v122_v43 }
 0xfc8   :  { %v552_v63 = vpack.c.bf16 %v1038_v62, %v1038_v62  ;;  %v543_v0 = vrot.slane %v1038_v62, %v122_v43 }
 0xfca   :  { %554 = vrot.lane.b32.xlu0 %v552_v63, %s890_s15 }
0x103c   :  { %v555_v4 = vpop.permute.xlu0 %554 }
0x103d   :  { %836 = vmatmul.mubr.msk.bf16.vlgmr.msra.gmra.mxu0 %vm40_vm2, %v555_v4 }
0x10fd   :  { %v593_v7 = vpop.f32.mrf.mxu0 }
0x10fe   :  { %v599_v8 = vadd.f32 %v593_v7, %v551_v6 }
0x10ff   :  { %v837_v9 = vpop.f32.mrf.mxu0 }
0x1100   :  { %879 = vtanh.f32 %v599_v8 }
0x1101   :  { %v596_v10 = vpop.f32.mrf.mxu0 }
0x1103   :  { %v838_v11 = vpop.f32.mrf.mxu0 }
0x110d   :  { %v880_v12 = vpop.eup %879 }
0x110e   :  { %605 = vrot.lane.b32.xlu1 %v880_v12, %s889_s14  ;;  %v601_v13 = vmul.f32 0.5, %v880_v12 }
0x1110   :  { %v602_v14 = vadd.f32 0.5, %v601_v13 }
0x1112   :  { %v603_v17 = vmul.f32 %v602_v14, %v529_v59 }
0x1180   :  { %v606_v15 = vpop.permute.xlu1 %605 }
0x1181   :  { %v608_v16 = vmul.f32 %v606_v15, %v602_v14 }
0x1183   :  { %610 = vrot.lane.b32.xlu0 %v608_v16, %s889_s14 }
0x11f5   :  { %v611_v18 = vpop.permute.xlu0 %610 }
0x11f6   :  { %v613_v19 = vadd.f32 %v611_v18, %v603_v17 }
0x11f8   :  { %881 = vtanh.f32 %v613_v19 }
0x1205   :  { %v882_v20 = vpop.eup %881 }
0x1206   :  { %616 = vrot.lane.b32.xlu1 %v882_v20, %s889_s14 }
0x1278   :  { %v617_v21 = vpop.permute.xlu1 %616 }
0x1279   :  { %v619_v22 = vmul.f32 %v617_v21, %v602_v14 }
0x127b   :  { %v636_v25 = vpack.c.bf16 %v619_v22, %v619_v22  ;;  %v627_v50 = vrot.slane %v619_v22, %v122_v43 }
0x127d   :  { %638 = vrot.lane.b32.xlu0 %v636_v25, %s890_s15 }
0x12ef   :  { %v639_v26 = vpop.permute.xlu0 %638 }
0x12f0   :  { %844 = vmatmul.mubr.msk.bf16.vlgmr.msra.gmra.mxu1 %vm40_vm2, %v639_v26 }
0x13b0   :  { %v677_v29 = vpop.f32.mrf.mxu1 }
0x13b1   :  { %v683_v30 = vadd.f32 %v677_v29, %v635_v28 }
0x13b2   :  { %v845_v31 = vpop.f32.mrf.mxu1 }
0x13b3   :  { %883 = vtanh.f32 %v683_v30 }
0x13b4   :  { %v680_v32 = vpop.f32.mrf.mxu1 }
0x13b6   :  { %v846_v33 = vpop.f32.mrf.mxu1 }
0x13c0   :  { %v884_v34 = vpop.eup %883 }
0x13c1   :  { %689 = vrot.lane.b32.xlu1 %v884_v34, %s889_s14  ;;  %v685_v38 = vmul.f32 0.5, %v884_v34 }
0x13c3   :  { %v686_v41 = vadd.f32 0.5, %v685_v38 }
0x13c5   :  { %v687_v51 = vmul.f32 %v686_v41, %v613_v19 }
0x1433   :  { %v690_v42 = vpop.permute.xlu1 %689 }
0x1434   :  { %v692_v46 = vmul.f32 %v690_v42, %v686_v41 }
0x1436   :  { %694 = vrot.lane.b32.xlu0 %v692_v46, %s889_s14 }
0x143a   :  { %124 = vrot.lane.b32.xlu0 %v123_v47, %s890_s15 }
0x143e   :  { %292 = vrot.lane.b32.xlu0 %v291_v48, %s890_s15 }
0x1442   :  { %460 = vrot.lane.b32.xlu0 %v459_v49, %s890_s15 }
0x1446   :  { %628 = vrot.lane.b32.xlu0 %v627_v50, %s890_s15 }
0x14a8   :  { %v695_v52 = vpop.permute.xlu0 %694 }
0x14a9   :  { %v697_v53 = vadd.f32 %v695_v52, %v687_v51 }
0x14ab   :  { %885 = vtanh.f32 %v697_v53  ;;  %v725_v54 = vrot.slane %v697_v53, %v122_v43 }
0x14ac   :  { %v125_v55 = vpop.permute.xlu0 %124 }
0x14ad   :  { %128 = vst.msk [vmem:[%s1108_s2] sm:$0x3] %vm16_vm0, %v125_v55  ;;  %726 = vrot.lane.b32.xlu0 %v725_v54, %s892_s3 }
0x14b0   :  { %v293_v24 = vpop.permute.xlu0 %292 }
0x14b1   :  { %743 = vst.msk [vmem:[%s1108_s2 + $0x4] sm:$0x3] %vm16_vm0, %v293_v24 }
0x14b4   :  { %v461_v3 = vpop.permute.xlu0 %460 }
0x14b5   :  { %749 = vst.msk [vmem:[%s1108_s2 + $0x8] sm:$0x3] %vm16_vm0, %v461_v3 }
0x14b8   :  { %v886_v45 = vpop.eup %885  ;;  %v629_v1 = vpop.permute.xlu0 %628 }
0x14b9   :  { %755 = vst.msk [vmem:[%s1108_s2 + $0xc] sm:$0x3] %vm16_vm0, %v629_v1  ;;  %700 = vrot.lane.b32.xlu1 %v886_v45, %s889_s14 }
0x14bd   :  { %208 = vrot.lane.b32.xlu1 %v207_v56, %s890_s15 }
0x14c1   :  { %376 = vrot.lane.b32.xlu1 %v375_v57, %s890_s15 }
0x14c5   :  { %544 = vrot.lane.b32.xlu1 %v543_v0, %s890_s15 }
0x151f   :  { %v727_v2 = vpop.permute.xlu0 %726 }
0x1520   :  { %729 = vst.msk [vmem:[#allocation3] sm:$0x3] %vm16_vm0, %v727_v2 }
0x152b   :  { %v701_v58 = vpop.permute.xlu1 %700 }
0x152c   :  { %v703_v59 = vmul.f32 %v701_v58, %v686_v41 }
0x152e   :  { %v711_v60 = vrot.slane %v703_v59, %v122_v43 }
0x152f   :  { %v209_v61 = vpop.permute.xlu1 %208 }
0x1530   :  { %740 = vst.msk [vmem:[%s1108_s2 + $0x2] sm:$0x3] %vm16_vm0, %v209_v61  ;;  %712 = vrot.lane.b32.xlu1 %v711_v60, %s890_s15 }
0x1533   :  { %v377_v44 = vpop.permute.xlu1 %376 }
0x1534   :  { %746 = vst.msk [vmem:[%s1108_s2 + $0x6] sm:$0x3] %vm16_vm0, %v377_v44 }
0x1537   :  { %v545_v23 = vpop.permute.xlu1 %544 }
0x1538   :  { %752 = vst.msk [vmem:[%s1108_s2 + $0xa] sm:$0x3] %vm16_vm0, %v545_v23 }
0x15a2   :  { %v713_v62 = vpop.permute.xlu1 %712 }
0x15a3   :  { %758 = vst.msk [vmem:[%s1108_s2 + $0xe] sm:$0x3] %vm16_vm0, %v713_v62  ;;  %717 = vst.msk [vmem:[#allocation2] sm:$0x3] %vm16_vm0, %v713_v62 }

</bundles_post_ra>
